<compile_context>
chip_gen: v6e
topology: v6e:2x2x1
jax: 0.10.0
libtpu: 0.0.40
codegen_flags: <defaults>
</compile_context>

<pallas_src>
import jax
import jax.numpy as jnp
from jax import lax
from jax.experimental import pallas as pl
from jax.experimental.pallas import tpu as pltpu

EPS = 1e-5
_MIB = 1024 * 1024


def _cf_layernorm_kernel(x_ref, w_ref, b_ref, o_ref):
    # x_ref / o_ref: (n_blk, C, l_tile)   w_ref / b_ref: (C, 1)
    x = x_ref[...].astype(jnp.float32)
    inv_c = 1.0 / x.shape[1]

    # Two-pass statistics over the channel (sublane) axis: numerically matches
    # PyTorch's LayerNorm (biased variance) and costs nothing extra because x
    # is already resident in VMEM (kernel is HBM-bound).
    mean = jnp.sum(x, axis=1, keepdims=True) * inv_c          # (n_blk, 1, l_tile)
    xc = x - mean
    var = jnp.sum(xc * xc, axis=1, keepdims=True) * inv_c     # biased variance
    inv = lax.rsqrt(var + EPS)                                # EUP slot

    w = w_ref[...].astype(jnp.float32)[None]                  # (1, C, 1)
    b = b_ref[...].astype(jnp.float32)[None]
    # NOTE: on a ragged last L block the padded lanes hold stale VMEM data;
    # stats are per-lane so valid lanes are unaffected and Pallas drops the
    # out-of-bounds stores for the clipped output block.
    o_ref[...] = (xc * inv * w + b).astype(o_ref.dtype)


def _tpu_vmem_bytes():
    """Physical VMEM per core, or None if it cannot be queried."""
    try:
        info = pltpu.get_tpu_info()
        vmem = getattr(info, "vmem_capacity_bytes", None)
        if vmem:
            return int(vmem)
    except Exception:
        pass
    return None


def _plan(N, C, L, itemsize, max_block_bytes=None):
    """Pick (n_blk, l_tile, in_buffers, vmem_limit_bytes)."""
    phys = _tpu_vmem_bytes()
    if phys is None:
        phys = 64 * _MIB                      # conservative: fits every generation
        deep_buffers = False                  # only deepen when we know the chip
    else:
        deep_buffers = phys < 100 * _MIB      # 64 MiB-VMEM part (v7x-class)

    in_bufs = 3 if deep_buffers else 2
    budget = int(phys * 0.6)                  # headroom for Pallas internals

    # Scoped footprint per block-byte: pipelined in/out buffers in the input
    # dtype plus ~4 f32-sized temporaries (x_f32, centered, squared, pre-cast
    # output) that the kernel body materializes.
    factor = (in_bufs + 2) + (4 * 4) // max(itemsize, 1)
    target = budget // factor
    target = max(1 * _MIB, min(8 * _MIB, target))
    if max_block_bytes is not None:           # test / override hook
        target = int(max_block_bytes)

    row_bytes = C * L * itemsize              # one (C, L) slab

    if row_bytes <= target:
        # Full-L blocks; batch over N to amortize per-grid-step overhead.
        l_tile = L
        n_blk = max(1, min(N, target // max(row_bytes, 1)))
        # Megacore: avoid a size-1 grid when there is work to split across TCs.
        if -(-N // n_blk) < 2 and N >= 2:
            n_blk = -(-N // 2)
    else:
        # Tile L in multiples of 128; floor keeps each strided DMA segment
        # (l_tile * itemsize bytes per channel row) >= ~2 KiB.
        n_blk = 1
        floor_lanes = 512 if itemsize >= 4 else 1024
        l_tile = (target // (C * itemsize)) // 128 * 128
        l_tile = max(l_tile, floor_lanes)
        l_cap = (L // 128) * 128
        if l_cap == 0:
            l_tile = L                        # tiny L: full dim is always legal
        else:
            l_tile = min(l_tile, l_cap)

    # Scoped VMEM limit: above the per-generation scoped defaults, below phys.
    vmem_limit = min(int(phys * 0.75), 96 * _MIB)
    return n_blk, l_tile, in_bufs, vmem_limit


def channel_first_layer_norm(x, weight, bias, *, max_block_bytes=None):
    """x: (N, C, L); weight/bias: (C,). Returns (N, C, L)."""
    N, C, L = x.shape
    itemsize = jnp.dtype(x.dtype).itemsize
    n_blk, l_tile, in_bufs, vmem_limit = _plan(N, C, L, itemsize, max_block_bytes)

    grid = (pl.cdiv(N, n_blk), pl.cdiv(L, l_tile))
    x_block = (n_blk, C, l_tile)
    x_index_map = lambda n, l: (n, 0, l)

    if in_bufs > 2 and hasattr(pl, "Buffered"):
        x_spec = pl.BlockSpec(x_block, x_index_map,
                              pipeline_mode=pl.Buffered(in_bufs))
    else:
        x_spec = pl.BlockSpec(x_block, x_index_map)

    w2 = weight.reshape(C, 1)
    b2 = bias.reshape(C, 1)
    wb_spec = pl.BlockSpec((C, 1), lambda n, l: (0, 0))   # resident, no re-DMA

    return pl.pallas_call(
        _cf_layernorm_kernel,
        out_shape=jax.ShapeDtypeStruct((N, C, L), x.dtype),
        grid=grid,
        in_specs=[x_spec, wb_spec, wb_spec],
        out_specs=pl.BlockSpec(x_block, x_index_map),
        compiler_params=pltpu.CompilerParams(
            dimension_semantics=("parallel", "parallel"),
            vmem_limit_bytes=vmem_limit,
        ),
    )(x, w2, b2)


def _reference(x, weight, bias):
    # Pure-JAX mirror of torch: transpose -> LayerNorm(C) -> transpose.
    xt = jnp.transpose(x, (0, 2, 1)).astype(jnp.float32)
    mean = jnp.mean(xt, axis=-1, keepdims=True)
    var = jnp.mean((xt - mean) ** 2, axis=-1, keepdims=True)
    y = (xt - mean) / jnp.sqrt(var + EPS) * weight + bias
    return jnp.transpose(y, (0, 2, 1)).astype(x.dtype)


if __name__ == "__main__":
    key = jax.random.PRNGKey(0)
    kx, kw, kb = jax.random.split(key, 3)

    # Small shapes consistent with the module (normalized_shape = C = 32).
    N, C, L = 2, 32, 16
    x = jax.random.normal(kx, (N, C, L), dtype=jnp.float32)
    weight = 1.0 + 0.1 * jax.random.normal(kw, (C,), dtype=jnp.float32)
    bias = 0.1 * jax.random.normal(kb, (C,), dtype=jnp.float32)

    out = jax.block_until_ready(channel_first_layer_norm(x, weight, bias))
    ref = _reference(x, weight, bias)
    assert out.shape == (N, C, L)
    assert jnp.allclose(out, ref, atol=1e-4, rtol=1e-4), "mismatch (N-blocked path)"

    # Second case exercises the lane-tiled path with a ragged last L block:
    # a 64 KiB block cap forces l_tile = 512 on L = 576 (remainder of 64 lanes).
    N2, C2, L2 = 2, 32, 576
    x2 = jax.random.normal(kx, (N2, C2, L2), dtype=jnp.float32)
    out2 = jax.block_until_ready(
        channel_first_layer_norm(x2, weight, bias, max_block_bytes=64 * 1024))
    ref2 = _reference(x2, weight, bias)
    assert out2.shape == (N2, C2, L2)
    assert jnp.allclose(out2, ref2, atol=1e-4, rtol=1e-4), "mismatch (L-tiled path)"

    print("KERNEL_OK")
</pallas_src>

<mosaic_0001>
module attributes {stable_mosaic.version = 11 : i64} {
  func.func @_cf_layernorm_kernel(%arg0: i32, %arg1: i32, %arg2: memref<1x32x16xf32, #tpu.memory_space<vmem>>, %arg3: memref<32x1xf32, #tpu.memory_space<vmem>>, %arg4: memref<32x1xf32, #tpu.memory_space<vmem>>, %arg5: memref<1x32x16xf32, #tpu.memory_space<vmem>>) attributes {dimension_semantics = [#tpu.dimension_semantics<parallel>, #tpu.dimension_semantics<parallel>], iteration_bounds = array<i64: 2, 1>, scalar_prefetch = 0 : i64, scratch_operands = 0 : i64, tpu.core_type = #tpu.core_type<tc>, window_params = [{transform_indices = @transform_0, window_bounds = array<i64: 1, 32, 16>}, {pipeline_mode = #tpu.pipeline_mode<synchronous>, transform_indices = @transform_1, window_bounds = array<i64: 32, 1>}, {pipeline_mode = #tpu.pipeline_mode<synchronous>, transform_indices = @transform_2, window_bounds = array<i64: 32, 1>}, {transform_indices = @transform_3, window_bounds = array<i64: 1, 32, 16>}]} {
    %c0 = arith.constant 0 : index
    %c0_0 = arith.constant 0 : index
    %c0_1 = arith.constant 0 : index
    %0 = vector.load %arg2[%c0, %c0_0, %c0_1] : memref<1x32x16xf32, #tpu.memory_space<vmem>>, vector<1x32x16xf32>
    %cst = arith.constant dense<0.000000e+00> : vector<1x16xf32>
    %1 = vector.multi_reduction <add>, %0, %cst [1] : vector<1x32x16xf32> to vector<1x16xf32>
    %2 = vector.shape_cast %1 : vector<1x16xf32> to vector<1x1x16xf32>
    %cst_2 = arith.constant 3.125000e-02 : f32
    %3 = vector.broadcast %cst_2 : f32 to vector<1x1x16xf32>
    %4 = arith.mulf %2, %3 : vector<1x1x16xf32>
    %5 = vector.broadcast %4 : vector<1x1x16xf32> to vector<1x32x16xf32>
    %6 = arith.subf %0, %5 : vector<1x32x16xf32>
    %7 = arith.mulf %6, %6 : vector<1x32x16xf32>
    %cst_3 = arith.constant dense<0.000000e+00> : vector<1x16xf32>
    %8 = vector.multi_reduction <add>, %7, %cst_3 [1] : vector<1x32x16xf32> to vector<1x16xf32>
    %9 = vector.shape_cast %8 : vector<1x16xf32> to vector<1x1x16xf32>
    %cst_4 = arith.constant 3.125000e-02 : f32
    %10 = vector.broadcast %cst_4 : f32 to vector<1x1x16xf32>
    %11 = arith.mulf %9, %10 : vector<1x1x16xf32>
    %cst_5 = arith.constant 9.99999974E-6 : f32
    %12 = vector.broadcast %cst_5 : f32 to vector<1x1x16xf32>
    %13 = arith.addf %11, %12 : vector<1x1x16xf32>
    %14 = math.rsqrt %13 : vector<1x1x16xf32>
    %c0_6 = arith.constant 0 : index
    %c0_7 = arith.constant 0 : index
    %15 = vector.load %arg3[%c0_6, %c0_7] : memref<32x1xf32, #tpu.memory_space<vmem>>, vector<32x1xf32>
    %16 = vector.shape_cast %15 : vector<32x1xf32> to vector<1x32x1xf32>
    %c0_8 = arith.constant 0 : index
    %c0_9 = arith.constant 0 : index
    %17 = vector.load %arg4[%c0_8, %c0_9] : memref<32x1xf32, #tpu.memory_space<vmem>>, vector<32x1xf32>
    %18 = vector.shape_cast %17 : vector<32x1xf32> to vector<1x32x1xf32>
    %19 = vector.broadcast %14 : vector<1x1x16xf32> to vector<1x32x16xf32>
    %20 = arith.mulf %6, %19 : vector<1x32x16xf32>
    %21 = vector.broadcast %16 : vector<1x32x1xf32> to vector<1x32x16xf32>
    %22 = arith.mulf %20, %21 : vector<1x32x16xf32>
    %23 = vector.broadcast %18 : vector<1x32x1xf32> to vector<1x32x16xf32>
    %24 = arith.addf %22, %23 : vector<1x32x16xf32>
    %c0_10 = arith.constant 0 : index
    %c0_11 = arith.constant 0 : index
    %c0_12 = arith.constant 0 : index
    %25 = vector.load %arg5[%c0_10, %c0_11, %c0_12] : memref<1x32x16xf32, #tpu.memory_space<vmem>>, vector<1x32x16xf32>
    tpu.vector_store %arg5[%c0_10, %c0_11, %c0_12], %24 {strides = array<i32>} : memref<1x32x16xf32, #tpu.memory_space<vmem>>, vector<1x32x16xf32>,
    return
  }
  func.func @transform_0(%arg0: i32, %arg1: i32) -> (i32, i32, i32) {
    %c0_i32 = arith.constant 0 : i32
    %c0_i32_0 = arith.constant 0 : i32
    return %arg0, %c0_i32, %arg1 : i32, i32, i32
  }
  func.func @transform_1(%arg0: i32, %arg1: i32) -> (i32, i32) {
    %c0_i32 = arith.constant 0 : i32
    %c0_i32_0 = arith.constant 0 : i32
    %c0_i32_1 = arith.constant 0 : i32
    return %c0_i32, %c0_i32_0 : i32, i32
  }
  func.func @transform_2(%arg0: i32, %arg1: i32) -> (i32, i32) {
    %c0_i32 = arith.constant 0 : i32
    %c0_i32_0 = arith.constant 0 : i32
    %c0_i32_1 = arith.constant 0 : i32
    return %c0_i32, %c0_i32_0 : i32, i32
  }
  func.func @transform_3(%arg0: i32, %arg1: i32) -> (i32, i32, i32) {
    %c0_i32 = arith.constant 0 : i32
    %c0_i32_0 = arith.constant 0 : i32
    return %arg0, %c0_i32, %arg1 : i32, i32, i32
  }
}

</mosaic_0001>

<bundles_post_ra>
// kernel: tpu_custom_call.1
= control target key start
LH: loop header
LB: loop body
LE: loop exit
PB: predicated region body
PF: predicated region fallthrough
CT: control target
= control target key end

     0   :  { %s479_s12 = smov 0   ;;  %s481_s13 = smov 0   ;;  %s555_s0 = inlined_call_operand.vmem [shape: f32[2,32,16], index: 0, kind: input, shape index: {}]   ;;  %s556_s1 = inlined_call_operand.vmem [shape: f32[32,1], index: 1, kind: input, shape index: {}]   ;;  %s557_s2 = inlined_call_operand.vmem [shape: f32[32,1], index: 2, kind: input, shape index: {}]   ;;  %s558_s3 = inlined_call_operand.vmem [shape: f32[2,32,16], index: 3, kind: output, shape index: {}]  }
   0x1   :  { %s483_s14 = smov 0  }
   0x2 LB: > { %s25_s15 = sadd.s32 1, %s452_s13  ;;  %p396_p0 = scmp.ge.s32.totalorder %s456_s14, 1  ;;  %s456_s14 = sphi %s483_s14, %s13_s14   ;;  %s452_s13 = sphi %s481_s13, %s560_s13   ;;  %s448_s12 = sphi %s479_s12, %s559_s12  }
   0x3   : > { %p27_p1 = scmp.ge.s32.totalorder %s25_s15, 2  ;;  %p156_p2 = scmp.lt.s32.totalorder %s456_s14, 3 }
   0x5   : > { %s562_s15 = smov (%p27_p1, %s25_s15), 0  ;;  %p157_p3 = pnand %p396_p0, %p156_p2 }
   0x6   : > { %p186_p4 = scmp.lt.s32.totalorder (!%p157_p3), %s448_s12, 1 }
   0x7   : > { %160 = sbr.rel (%p157_p3) target bundleno = 153 (0x99), region = 32 }
   0xc   : > { %v247_v0 = vld [vmem:[%s556_s1 + $0x10] sm:$0xff]  ;;  %v245_v1 = vld [vmem:[%s556_s1] sm:$0xff]  ;;  %v458_v2 = vmov 0   ;;  %s564_s12 = smov (!%p186_p4, %s448_s12), 1  ;;  %v248_v3 = vld [vmem:[%s556_s1 + $0x18] sm:$0xff]  ;;  %vm206_vm0 = vcmask 130048  }
   0xd   : > { %431 = vset.pattern.permute.xlu1 %v458_v2  ;;  %430 = vset.pattern.permute.xlu0 %v458_v2  ;;  %v246_v4 = vld [vmem:[%s556_s1 + $0x8] sm:$0xff]  ;;  %s403_s24 = sshll.u32 %s564_s12, 5  ;;  %v249_v6 = vld [vmem:[%s557_s2] sm:$0xff]  ;;  %v252_v7 = vld [vmem:[%s557_s2 + $0x18] sm:$0xff] }
   0xe   : > { %269 = vperm.xlu1 %431, %v247_v0   ;;  %259 = vperm.xlu0 %430, %v245_v1   ;;  %v250_v5 = vld [vmem:[%s557_s2 + $0x8] sm:$0xff]  ;;  %s193_s4 = scalar_lea.vmem %s555_s0, %s403_s24  ;;  %v251_v8 = vld [vmem:[%s557_s2 + $0x10] sm:$0xff]  ;;  %s201_s11 = scalar_lea.vmem %s558_s3, %s403_s24 }
   0xf   : > { %v202_v9 = vld [vmem:[%s193_s4] sm:$0xff]  ;;  %v203_v10 = vld [vmem:[%s193_s4 + $0x8] sm:$0xff]  ;;  %v204_v13 = vld [vmem:[%s193_s4 + $0x10] sm:$0xff] }
  0x10   : > { %v207_v11 = vsel %vm206_vm0, %v202_v9, 0.0  ;;  %v208_v12 = vsel %vm206_vm0, %v203_v10, 0.0  ;;  %v210_v15 = vsel %vm206_vm0, %v204_v13, 0.0  ;;  %v205_v16 = vld [vmem:[%s193_s4 + $0x18] sm:$0xff] }
  0x11   : > { %v209_v14 = vadd.f32 %v208_v12, %v207_v11  ;;  %v212_v18 = vsel %vm206_vm0, %v205_v16, 0.0 }
  0x12   : > { %274 = vperm.xlu1 %431, %v248_v3   ;;  %264 = vperm.xlu0 %430, %v246_v4  }
  0x13   : > { %v211_v17 = vadd.f32 %v210_v15, %v209_v14 }
  0x15   : > { %v213_v19 = vadd.f32 %v212_v18, %v211_v17 }
  0x16   : > { %288 = vperm.xlu1 %431, %v250_v5   ;;  %283 = vperm.xlu0 %430, %v249_v6  }
  0x17   : > { %v214_v20 = vrot.slane %v213_v19, 4 }
  0x19   : > { %v215_v21 = vadd.f32 %v214_v20, %v213_v19 }
  0x1a   : > { %298 = vperm.xlu1 %431, %v252_v7   ;;  %293 = vperm.xlu0 %430, %v251_v8  }
  0x1b   : > { %v216_v22 = vrot.slane %v215_v21, 2 }
  0x1d   : > { %v217_v23 = vadd.f32 %v216_v22, %v215_v21 }
  0x1f   : > { %v218_v24 = vrot.slane %v217_v23, 1 }
  0x21   : > { %v219_v25 = vadd.f32 %v218_v24, %v217_v23 }
  0x23   : > { %v220_v26 = vmul.f32 0.03125, %v219_v25 }
  0x25   : > { %v221_v27 = vsub.f32 %v202_v9, %v220_v26  ;;  %v222_v28 = vsub.f32 %v203_v10, %v220_v26  ;;  %v223_v29 = vsub.f32 %v204_v13, %v220_v26  ;;  %v224_v32 = vsub.f32 %v205_v16, %v220_v26 }
  0x27   : > { %v225_v30 = vmul.f32 %v221_v27, %v221_v27  ;;  %v226_v31 = vmul.f32 %v222_v28, %v222_v28  ;;  %v227_v33 = vmul.f32 %v223_v29, %v223_v29  ;;  %v228_v37 = vmul.f32 %v224_v32, %v224_v32 }
  0x29   : > { %v229_v34 = vsel %vm206_vm0, %v225_v30, 0.0  ;;  %v230_v35 = vsel %vm206_vm0, %v226_v31, 0.0  ;;  %v232_v38 = vsel %vm206_vm0, %v227_v33, 0.0  ;;  %v234_v40 = vsel %vm206_vm0, %v228_v37, 0.0 }
  0x2a   : > { %v231_v36 = vadd.f32 %v230_v35, %v229_v34 }
  0x2c   : > { %v233_v39 = vadd.f32 %v232_v38, %v231_v36 }
  0x2e   : > { %v235_v41 = vadd.f32 %v234_v40, %v233_v39 }
  0x30   : > { %v236_v42 = vrot.slane %v235_v41, 4 }
  0x32   : > { %v237_v43 = vadd.f32 %v236_v42, %v235_v41 }
  0x34   : > { %v238_v44 = vrot.slane %v237_v43, 2 }
  0x36   : > { %v239_v45 = vadd.f32 %v238_v44, %v237_v43 }
  0x38   : > { %v240_v46 = vrot.slane %v239_v45, 1 }
  0x3a   : > { %v241_v47 = vadd.f32 %v240_v46, %v239_v45 }
  0x3c   : > { %v242_v48 = vmul.f32 0.03125, %v241_v47 }
  0x3e   : > { %v243_v49 = vadd.f32 1e-05, %v242_v48 }
  0x40   : > { %432 = vrsqrt.f32 %v243_v49 }
  0x4d   : > { %v433_v50 = vpop.eup %432 }
  0x4e   : > { %v253_v53 = vmul.f32 %v433_v50, %v221_v27  ;;  %v254_v54 = vmul.f32 %v433_v50, %v222_v28  ;;  %v255_v57 = vmul.f32 %v433_v50, %v223_v29  ;;  %v256_v59 = vmul.f32 %v433_v50, %v224_v32 }
  0x89   : > { %v270_v51 = vpop.permute.xlu1 %269  ;;  %v260_v52 = vpop.permute.xlu0 %259 }
  0x8a   : > { %v277_v58 = vmul.f32 %v260_v52, %v253_v53  ;;  %v279_v1 = vmul.f32 %v270_v51, %v255_v57 }
  0x8d   : > { %v275_v55 = vpop.permute.xlu1 %274  ;;  %v265_v56 = vpop.permute.xlu0 %264 }
  0x8e   : > { %v278_v60 = vmul.f32 %v265_v56, %v254_v54  ;;  %v280_v2 = vmul.f32 %v275_v55, %v256_v59 }
  0x91   : > { %v289_v61 = vpop.permute.xlu1 %288  ;;  %v284_v62 = vpop.permute.xlu0 %283 }
  0x92   : > { %v302_v63 = vadd.f32 %v289_v61, %v278_v60  ;;  %v301_v0 = vadd.f32 %v284_v62, %v277_v58 }
  0x94   : > { %306 = vst.msk [vmem:[%s201_s11 + $0x8] sm:$0xff] %vm206_vm0, %v302_v63  ;;  %305 = vst.msk [vmem:[%s201_s11] sm:$0xff] %vm206_vm0, %v301_v0 }
  0x95   : > { %v299_v3 = vpop.permute.xlu1 %298  ;;  %v294_v4 = vpop.permute.xlu0 %293 }
  0x96   : > { %v304_v5 = vadd.f32 %v299_v3, %v280_v2  ;;  %v303_v6 = vadd.f32 %v294_v4, %v279_v1 }
  0x98   : > { %308 = vst.msk [vmem:[%s201_s11 + $0x18] sm:$0xff] %vm206_vm0, %v304_v5  ;;  %307 = vst.msk [vmem:[%s201_s11 + $0x10] sm:$0xff] %vm206_vm0, %v303_v6 }
  0x99 PF: > { %s13_s14 = sadd.s32 1, %s456_s14   ;;  %s559_s12 = smov %s452_s13 }
  0x9a   : > { %p10_p5 = scmp.ge.s32.totalorder %s13_s14, 4   ;;  %s560_s13 = smov %s562_s15 }
  0x9c   :  { %12 = sbr.rel (!%p10_p5) target bundleno = 2 (0x2), region = 62 }

</bundles_post_ra>
